<compile_context>
chip_gen: v6e
topology: v6e:2x2x1
jax: 0.10.0
libtpu: 0.0.40
codegen_flags: <defaults>
</compile_context>

<pallas_src>
import functools

import jax
import jax.numpy as jnp
import numpy as np
from jax.experimental import pallas as pl
from jax.experimental.pallas import tpu as pltpu


def _focal_loss_kernel(logits_ref, labels_ref, *refs, alpha, gamma,
                       ignore_index, hw, tiles_per_split, total_tiles,
                       needs_mask):
    if ignore_index is None:
        sum_ref, acc_s = refs
        cnt_ref = None
        acc_c = None
    else:
        sum_ref, cnt_ref, acc_s, acc_c = refs

    si = pl.program_id(1)
    j = pl.program_id(2)
    t = si * tiles_per_split + j          # global (unclamped) row-tile index

    @pl.when(j == 0)
    def _():
        acc_s[...] = jnp.zeros_like(acc_s)
        if acc_c is not None:
            acc_c[...] = jnp.zeros_like(acc_c)

    labels = labels_ref[0]                # (R, 128) int32
    num_classes = logits_ref.shape[1]
    r, l = labels.shape

    # ---- class-axis reductions as an unrolled elementwise loop (VPU only,
    # no MXU, no XLU cross-sublane reduce) ----
    m = logits_ref[0, 0].astype(jnp.float32)            # running max (R, 128)
    for k in range(1, num_classes):
        m = jnp.maximum(m, logits_ref[0, k].astype(jnp.float32))

    denom = jnp.zeros_like(m)      # sum_k exp(x_k - m)
    logit_y = jnp.zeros_like(m)    # x_label
    e_y = jnp.zeros_like(m)        # exp(x_label - m)
    for k in range(num_classes):
        xk = logits_ref[0, k].astype(jnp.float32)
        ek = jnp.exp(xk - m)
        denom = denom + ek
        sel = labels == k
        logit_y = jnp.where(sel, xk, logit_y)
        e_y = jnp.where(sel, ek, e_y)
    # NOTE: labels outside [0, C) that are not ignore_index behave as if the
    # gathered logit were -inf (pt = 0, loss = alpha * lse); PyTorch would
    # raise.  Documented precondition: labels in [0, C) or == ignore_index.

    # ---- per-pixel focal term, fully (R, 128)-dense ----
    ce = jnp.maximum(m + jnp.log(denom) - logit_y, 0.0)
    pt = e_y / denom               # reuse exp(x_y - m); pt <= 1 by construction
    one_m_pt = 1.0 - pt

    g = float(gamma)
    if g == int(g) and int(g) >= 0:
        # integer gamma: exponentiation by squaring on the VPU (no EUP pow)
        n = int(g)
        if n == 0:
            mod = jnp.ones_like(one_m_pt)
        else:
            mod = None
            base = one_m_pt
            while n:
                if n & 1:
                    mod = base if mod is None else mod * base
                n >>= 1
                if n:
                    base = base * base
    else:
        mod = jnp.maximum(one_m_pt, 0.0) ** g
    focal = alpha * (mod * ce)                                     # (R, 128)

    def pixel_valid_mask():
        row = jax.lax.broadcasted_iota(jnp.int32, (r, l), 0)
        lane = jax.lax.broadcasted_iota(jnp.int32, (r, l), 1)
        pixel = (t * r + row) * l + lane
        return pixel < hw

    if ignore_index is None:
        if needs_mask:
            @pl.when(t < total_tiles - 1)
            def _():
                # interior tile: all pixels valid -> no mask work at all
                acc_s[...] += focal

            @pl.when(t >= total_tiles - 1)
            def _():
                # tail / duplicated tile: select (NOT multiply) so garbage or
                # NaN in overrun rows cannot propagate into the sum
                acc_s[...] += jnp.where(pixel_valid_mask(), focal, 0.0)
        else:
            acc_s[...] += focal
    else:
        valid = labels != ignore_index
        if needs_mask:
            valid = jnp.logical_and(valid, pixel_valid_mask())
        acc_s[...] += jnp.where(valid, focal, 0.0)
        acc_c[...] += jnp.where(valid, 1.0, 0.0)

    @pl.when(j == pl.num_programs(2) - 1)
    def _():
        sum_ref[...] = jnp.sum(acc_s[...]).reshape(sum_ref.shape)
        if cnt_ref is not None:
            cnt_ref[...] = jnp.sum(acc_c[...]).reshape(cnt_ref.shape)


def focal_loss(logits, labels, *, alpha=0.25, gamma=2.0, reduction="mean",
               ignore_index=None, block_rows=None):
    """Focal loss matching FocalLoss.forward.

    logits: (B, C, H, W) float (f32 or bf16), labels: (B, H, W) int.
    """
    assert reduction in ("mean", "sum"), reduction
    # TODO(synk): reduction='none' in the PyTorch module returns a
    # data-dependent-length vector (after ignore_index boolean filtering);
    # not implemented here.
    b, c, h, w = logits.shape
    hw = h * w
    lanes = 128
    rows = pl.cdiv(hw, lanes)
    hw_pad = rows * lanes

    # Free reshapes (NCHW stays contiguous) — no HBM transpose.
    x = logits.reshape(b, c, hw)
    y = labels.reshape(b, hw).astype(jnp.int32)
    if hw_pad != hw:
        # Only non-128-multiple H*W pays this copy; aligned shapes skip it.
        x = jnp.pad(x, ((0, 0), (0, 0), (0, hw_pad - hw)))
        y = jnp.pad(y, ((0, 0), (0, hw_pad - hw)))
    x = x.reshape(b, c, rows, lanes)
    y = y.reshape(b, rows, lanes)

    # ---- per-generation VMEM budget & row-tile size ----
    try:
        vmem_cap = int(pltpu.get_tpu_info().vmem_capacity_bytes)
    except Exception:
        vmem_cap = 64 * 1024 * 1024        # conservative fallback (v7x-sized)
    vmem_limit = min((vmem_cap * 5) // 8, 96 * 1024 * 1024)

    itemsize = logits.dtype.itemsize
    n_acc = 1 if ignore_index is None else 2
    # double-buffered logits + labels blocks + f32 accumulator(s), per row
    bytes_per_row = lanes * (2 * c * itemsize + 2 * 4 + n_acc * 4)
    tr_budget = max(8, (vmem_limit // 2) // bytes_per_row)   # half left for temps
    tr_cap = max(8, (4 * 1024 * 1024) // (c * lanes * itemsize))  # <=4MiB logits/blk
    if block_rows is not None:
        tr = max(1, int(block_rows))
    else:
        tr = min(tr_budget, tr_cap)
    tr = min(tr, rows)
    if tr < rows:
        tr = max(8, (tr // 8) * 8)         # (8,128) rule when not full-extent

    total_tiles = pl.cdiv(rows, tr)
    # v7x: guarantee >= 2 parallel work items (2 TensorCores) even when B == 1.
    n_splits = 2 if (b == 1 and total_tiles >= 2) else 1
    tiles_per_split = pl.cdiv(total_tiles, n_splits)
    needs_mask = n_splits * tiles_per_split * tr * lanes > hw

    if n_splits * tiles_per_split > total_tiles:
        # Odd tile count split across 2 cores: clamp the duplicated tile to the
        # last real block; its contribution is fully masked in-kernel.
        def row_block(bi, si, j):
            return jnp.minimum(si * tiles_per_split + j, total_tiles - 1)
    else:
        def row_block(bi, si, j):
            return si * tiles_per_split + j

    kernel = functools.partial(
        _focal_loss_kernel, alpha=float(alpha), gamma=float(gamma),
        ignore_index=ignore_index, hw=hw, tiles_per_split=tiles_per_split,
        total_tiles=total_tiles, needs_mask=needs_mask)

    out_shape = [jax.ShapeDtypeStruct((b, n_splits, 1, 1), jnp.float32)]
    out_specs = [pl.BlockSpec((1, 1, 1, 1), lambda bi, si, j: (bi, si, 0, 0))]
    scratch = [pltpu.VMEM((tr, lanes), jnp.float32)]   # lane/sublane-dense sum acc
    if ignore_index is not None:
        out_shape.append(jax.ShapeDtypeStruct((b, n_splits, 1, 1), jnp.float32))
        out_specs.append(pl.BlockSpec((1, 1, 1, 1),
                                      lambda bi, si, j: (bi, si, 0, 0)))
        scratch.append(pltpu.VMEM((tr, lanes), jnp.float32))   # valid-count acc

    outs = pl.pallas_call(
        kernel,
        out_shape=tuple(out_shape),
        grid_spec=pltpu.PrefetchScalarGridSpec(
            num_scalar_prefetch=0,
            grid=(b, n_splits, tiles_per_split),
            in_specs=[
                pl.BlockSpec((1, c, tr, lanes),
                             lambda bi, si, j: (bi, 0, row_block(bi, si, j), 0)),
                pl.BlockSpec((1, tr, lanes),
                             lambda bi, si, j: (bi, row_block(bi, si, j), 0)),
            ],
            out_specs=tuple(out_specs),
            scratch_shapes=scratch,
        ),
        compiler_params=pltpu.CompilerParams(
            dimension_semantics=("parallel", "parallel", "arbitrary"),
            vmem_limit_bytes=int(vmem_limit)),
    )(x, y)

    loss_sum = jnp.sum(outs[0])
    if reduction == "sum":
        return loss_sum
    if ignore_index is None:
        return loss_sum / float(b * hw)
    cnt = jnp.sum(outs[1])
    # PyTorch yields NaN when every pixel is ignored; return 0 instead.
    return loss_sum / jnp.maximum(cnt, 1.0)


def _focal_loss_ref(logits, labels, alpha=0.25, gamma=2.0, ignore_index=None):
    b, c, h, w = logits.shape
    x = jnp.transpose(logits, (0, 2, 3, 1)).reshape(-1, c).astype(jnp.float32)
    y = labels.reshape(-1)
    lse = jax.scipy.special.logsumexp(x, axis=-1)
    ce = lse - jnp.take_along_axis(x, y[:, None], axis=-1)[:, 0]
    pt = jnp.exp(-ce)
    focal = alpha * (1.0 - pt) ** gamma * ce
    if ignore_index is not None:
        m = (y != ignore_index).astype(jnp.float32)
        return jnp.sum(focal * m) / jnp.sum(m)
    return jnp.mean(focal)


if __name__ == "__main__":
    key = jax.random.PRNGKey(0)
    k1, k2, k3, k4 = jax.random.split(key, 4)

    # Primary small shape consistent with the module: (B, C, H, W) = (2, 4, 16, 16)
    B, C, H, W = 2, 4, 16, 16
    logits = jax.random.normal(k1, (B, C, H, W), dtype=jnp.float32)
    labels = jax.random.randint(k2, (B, H, W), 0, C, dtype=jnp.int32)

    loss = jax.block_until_ready(focal_loss(logits, labels))
    ref = jax.block_until_ready(_focal_loss_ref(logits, labels))
    np.testing.assert_allclose(np.asarray(loss), np.asarray(ref),
                               rtol=1e-5, atol=1e-6)

    loss_ig = jax.block_until_ready(focal_loss(logits, labels, ignore_index=0))
    ref_ig = jax.block_until_ready(_focal_loss_ref(logits, labels,
                                                   ignore_index=0))
    np.testing.assert_allclose(np.asarray(loss_ig), np.asarray(ref_ig),
                               rtol=1e-5, atol=1e-6)

    loss_sum = jax.block_until_ready(focal_loss(logits, labels, reduction="sum"))
    np.testing.assert_allclose(np.asarray(loss_sum),
                               np.asarray(ref) * (B * H * W),
                               rtol=1e-5, atol=1e-5)

    # B == 1 with several row tiles: exercises the 2-way "parallel" split axis
    # (feeds both TensorCores on v7x), accumulation across row tiles, and the
    # clamped + masked duplicated tail tile (odd tile count).
    B2, C2, H2, W2 = 1, 3, 64, 80           # H*W = 5120 -> 40 rows of 128 lanes
    logits2 = jax.random.normal(k3, (B2, C2, H2, W2), dtype=jnp.float32)
    labels2 = jax.random.randint(k4, (B2, H2, W2), 0, C2, dtype=jnp.int32)
    loss2 = jax.block_until_ready(focal_loss(logits2, labels2, block_rows=16))
    ref2 = jax.block_until_ready(_focal_loss_ref(logits2, labels2))
    np.testing.assert_allclose(np.asarray(loss2), np.asarray(ref2),
                               rtol=1e-5, atol=1e-6)

    print("KERNEL_OK")
</pallas_src>

<mosaic_0001>
module attributes {stable_mosaic.version = 11 : i64} {
  func.func @_focal_loss_kernel(%arg0: i32, %arg1: i32, %arg2: i32, %arg3: memref<1x4x2x128xf32, #tpu.memory_space<vmem>>, %arg4: memref<1x2x128xi32, #tpu.memory_space<vmem>>, %arg5: memref<1x1x1x1xf32, #tpu.memory_space<vmem>>, %arg6: memref<2x128xf32, #tpu.memory_space<vmem>>) attributes {dimension_semantics = [#tpu.dimension_semantics<parallel>, #tpu.dimension_semantics<parallel>, #tpu.dimension_semantics<arbitrary>], iteration_bounds = array<i64: 2, 1, 1>, scalar_prefetch = 0 : i64, scratch_operands = 1 : i64, tpu.core_type = #tpu.core_type<tc>, window_params = [{transform_indices = @transform_0, window_bounds = array<i64: 1, 4, 2, 128>}, {transform_indices = @transform_1, window_bounds = array<i64: 1, 2, 128>}, {transform_indices = @transform_2, window_bounds = array<i64: 1, 1, 1, 1>}]} {
    %c0_i32 = arith.constant 0 : i32
    %0 = arith.cmpi eq, %arg2, %c0_i32 : i32
    %1 = arith.extui %0 : i1 to i32
    %c0_i32_0 = arith.constant 0 : i32
    %2 = arith.cmpi ne, %1, %c0_i32_0 : i32
    scf.if %2 {
      %cst_44 = arith.constant 0.000000e+00 : f32
      %73 = vector.broadcast %cst_44 : f32 to vector<2x128xf32>
      %c0_45 = arith.constant 0 : index
      %c0_46 = arith.constant 0 : index
      %74 = vector.load %arg6[%c0_45, %c0_46] : memref<2x128xf32, #tpu.memory_space<vmem>>, vector<2x128xf32>
      tpu.vector_store %arg6[%c0_45, %c0_46], %73 {strides = array<i32>} : memref<2x128xf32, #tpu.memory_space<vmem>>, vector<2x128xf32>,
    } else {
    }
    %c0 = arith.constant 0 : index
    %c0_1 = arith.constant 0 : index
    %c0_2 = arith.constant 0 : index
    %3 = vector.load %arg4[%c0, %c0_1, %c0_2] : memref<1x2x128xi32, #tpu.memory_space<vmem>>, vector<1x2x128xi32>
    %4 = vector.shape_cast %3 : vector<1x2x128xi32> to vector<2x128xi32>
    %c0_3 = arith.constant 0 : index
    %c0_4 = arith.constant 0 : index
    %c0_5 = arith.constant 0 : index
    %c0_6 = arith.constant 0 : index
    %5 = vector.load %arg3[%c0_3, %c0_4, %c0_5, %c0_6] : memref<1x4x2x128xf32, #tpu.memory_space<vmem>>, vector<1x1x2x128xf32>
    %6 = vector.shape_cast %5 : vector<1x1x2x128xf32> to vector<2x128xf32>
    %c0_7 = arith.constant 0 : index
    %c1 = arith.constant 1 : index
    %c0_8 = arith.constant 0 : index
    %c0_9 = arith.constant 0 : index
    %7 = vector.load %arg3[%c0_7, %c1, %c0_8, %c0_9] : memref<1x4x2x128xf32, #tpu.memory_space<vmem>>, vector<1x1x2x128xf32>
    %8 = vector.shape_cast %7 : vector<1x1x2x128xf32> to vector<2x128xf32>
    %9 = arith.maximumf %6, %8 : vector<2x128xf32>
    %c0_10 = arith.constant 0 : index
    %c2 = arith.constant 2 : index
    %c0_11 = arith.constant 0 : index
    %c0_12 = arith.constant 0 : index
    %10 = vector.load %arg3[%c0_10, %c2, %c0_11, %c0_12] : memref<1x4x2x128xf32, #tpu.memory_space<vmem>>, vector<1x1x2x128xf32>
    %11 = vector.shape_cast %10 : vector<1x1x2x128xf32> to vector<2x128xf32>
    %12 = arith.maximumf %9, %11 : vector<2x128xf32>
    %c0_13 = arith.constant 0 : index
    %c3 = arith.constant 3 : index
    %c0_14 = arith.constant 0 : index
    %c0_15 = arith.constant 0 : index
    %13 = vector.load %arg3[%c0_13, %c3, %c0_14, %c0_15] : memref<1x4x2x128xf32, #tpu.memory_space<vmem>>, vector<1x1x2x128xf32>
    %14 = vector.shape_cast %13 : vector<1x1x2x128xf32> to vector<2x128xf32>
    %15 = arith.maximumf %12, %14 : vector<2x128xf32>
    %cst = arith.constant 0.000000e+00 : f32
    %16 = vector.broadcast %cst : f32 to vector<2x128xf32>
    %cst_16 = arith.constant 0.000000e+00 : f32
    %17 = vector.broadcast %cst_16 : f32 to vector<2x128xf32>
    %cst_17 = arith.constant 0.000000e+00 : f32
    %18 = vector.broadcast %cst_17 : f32 to vector<2x128xf32>
    %c0_18 = arith.constant 0 : index
    %c0_19 = arith.constant 0 : index
    %c0_20 = arith.constant 0 : index
    %c0_21 = arith.constant 0 : index
    %19 = vector.load %arg3[%c0_18, %c0_19, %c0_20, %c0_21] : memref<1x4x2x128xf32, #tpu.memory_space<vmem>>, vector<1x1x2x128xf32>
    %20 = vector.shape_cast %19 : vector<1x1x2x128xf32> to vector<2x128xf32>
    %21 = arith.subf %20, %15 : vector<2x128xf32>
    %22 = math.exp %21 : vector<2x128xf32>
    %23 = arith.addf %16, %22 : vector<2x128xf32>
    %c0_i32_22 = arith.constant 0 : i32
    %24 = vector.broadcast %c0_i32_22 : i32 to vector<2x128xi32>
    %25 = arith.cmpi eq, %4, %24 : vector<2x128xi32>
    %26 = arith.select %25, %20, %17 : vector<2x128xi1>, vector<2x128xf32>
    %27 = arith.select %25, %22, %18 : vector<2x128xi1>, vector<2x128xf32>
    %c0_23 = arith.constant 0 : index
    %c1_24 = arith.constant 1 : index
    %c0_25 = arith.constant 0 : index
    %c0_26 = arith.constant 0 : index
    %28 = vector.load %arg3[%c0_23, %c1_24, %c0_25, %c0_26] : memref<1x4x2x128xf32, #tpu.memory_space<vmem>>, vector<1x1x2x128xf32>
    %29 = vector.shape_cast %28 : vector<1x1x2x128xf32> to vector<2x128xf32>
    %30 = arith.subf %29, %15 : vector<2x128xf32>
    %31 = math.exp %30 : vector<2x128xf32>
    %32 = arith.addf %23, %31 : vector<2x128xf32>
    %c1_i32 = arith.constant 1 : i32
    %33 = vector.broadcast %c1_i32 : i32 to vector<2x128xi32>
    %34 = arith.cmpi eq, %4, %33 : vector<2x128xi32>
    %35 = arith.select %34, %29, %26 : vector<2x128xi1>, vector<2x128xf32>
    %36 = arith.select %34, %31, %27 : vector<2x128xi1>, vector<2x128xf32>
    %c0_27 = arith.constant 0 : index
    %c2_28 = arith.constant 2 : index
    %c0_29 = arith.constant 0 : index
    %c0_30 = arith.constant 0 : index
    %37 = vector.load %arg3[%c0_27, %c2_28, %c0_29, %c0_30] : memref<1x4x2x128xf32, #tpu.memory_space<vmem>>, vector<1x1x2x128xf32>
    %38 = vector.shape_cast %37 : vector<1x1x2x128xf32> to vector<2x128xf32>
    %39 = arith.subf %38, %15 : vector<2x128xf32>
    %40 = math.exp %39 : vector<2x128xf32>
    %41 = arith.addf %32, %40 : vector<2x128xf32>
    %c2_i32 = arith.constant 2 : i32
    %42 = vector.broadcast %c2_i32 : i32 to vector<2x128xi32>
    %43 = arith.cmpi eq, %4, %42 : vector<2x128xi32>
    %44 = arith.select %43, %38, %35 : vector<2x128xi1>, vector<2x128xf32>
    %45 = arith.select %43, %40, %36 : vector<2x128xi1>, vector<2x128xf32>
    %c0_31 = arith.constant 0 : index
    %c3_32 = arith.constant 3 : index
    %c0_33 = arith.constant 0 : index
    %c0_34 = arith.constant 0 : index
    %46 = vector.load %arg3[%c0_31, %c3_32, %c0_33, %c0_34] : memref<1x4x2x128xf32, #tpu.memory_space<vmem>>, vector<1x1x2x128xf32>
    %47 = vector.shape_cast %46 : vector<1x1x2x128xf32> to vector<2x128xf32>
    %48 = arith.subf %47, %15 : vector<2x128xf32>
    %49 = math.exp %48 : vector<2x128xf32>
    %50 = arith.addf %41, %49 : vector<2x128xf32>
    %c3_i32 = arith.constant 3 : i32
    %51 = vector.broadcast %c3_i32 : i32 to vector<2x128xi32>
    %52 = arith.cmpi eq, %4, %51 : vector<2x128xi32>
    %53 = arith.select %52, %47, %44 : vector<2x128xi1>, vector<2x128xf32>
    %54 = arith.select %52, %49, %45 : vector<2x128xi1>, vector<2x128xf32>
    %55 = math.log %50 : vector<2x128xf32>
    %56 = arith.addf %15, %55 : vector<2x128xf32>
    %57 = arith.subf %56, %53 : vector<2x128xf32>
    %cst_35 = arith.constant 0.000000e+00 : f32
    %58 = vector.broadcast %cst_35 : f32 to vector<2x128xf32>
    %59 = arith.maximumf %57, %58 : vector<2x128xf32>
    %60 = arith.divf %54, %50 : vector<2x128xf32>
    %cst_36 = arith.constant 1.000000e+00 : f32
    %61 = vector.broadcast %cst_36 : f32 to vector<2x128xf32>
    %62 = arith.subf %61, %60 : vector<2x128xf32>
    %63 = arith.mulf %62, %62 : vector<2x128xf32>
    %64 = arith.mulf %63, %59 : vector<2x128xf32>
    %cst_37 = arith.constant 2.500000e-01 : f32
    %65 = vector.broadcast %cst_37 : f32 to vector<2x128xf32>
    %66 = arith.mulf %65, %64 : vector<2x128xf32>
    %c0_38 = arith.constant 0 : index
    %c0_39 = arith.constant 0 : index
    %67 = vector.load %arg6[%c0_38, %c0_39] : memref<2x128xf32, #tpu.memory_space<vmem>>, vector<2x128xf32>
    %68 = arith.addf %67, %66 : vector<2x128xf32>
    %c0_40 = arith.constant 0 : index
    %c0_41 = arith.constant 0 : index
    %69 = vector.load %arg6[%c0_40, %c0_41] : memref<2x128xf32, #tpu.memory_space<vmem>>, vector<2x128xf32>
    tpu.vector_store %arg6[%c0_40, %c0_41], %68 {strides = array<i32>} : memref<2x128xf32, #tpu.memory_space<vmem>>, vector<2x128xf32>,
    %c0_i32_42 = arith.constant 0 : i32
    %70 = arith.cmpi eq, %arg2, %c0_i32_42 : i32
    %71 = arith.extui %70 : i1 to i32
    %c0_i32_43 = arith.constant 0 : i32
    %72 = arith.cmpi ne, %71, %c0_i32_43 : i32
    scf.if %72 {
      %c0_44 = arith.constant 0 : index
      %c0_45 = arith.constant 0 : index
      %73 = vector.load %arg6[%c0_44, %c0_45] : memref<2x128xf32, #tpu.memory_space<vmem>>, vector<2x128xf32>
      %74 = vector.shape_cast %73 : vector<2x128xf32> to vector<1x2x128xf32>
      %cst_46 = arith.constant dense<0.000000e+00> : vector<1xf32>
      %75 = vector.multi_reduction <add>, %74, %cst_46 [1, 2] : vector<1x2x128xf32> to vector<1xf32>
      %76 = vector.shape_cast %75 : vector<1xf32> to vector<1x1x1xf32>
      %77 = vector.extract %76[0, 0, 0] : f32 from vector<1x1x1xf32>
      %78 = vector.broadcast %77 : f32 to vector<1x1x1x1xf32>
      %c0_47 = arith.constant 0 : index
      %c0_48 = arith.constant 0 : index
      %c0_49 = arith.constant 0 : index
      %c0_50 = arith.constant 0 : index
      %79 = vector.load %arg5[%c0_47, %c0_48, %c0_49, %c0_50] : memref<1x1x1x1xf32, #tpu.memory_space<vmem>>, vector<1x1x1x1xf32>
      tpu.vector_store %arg5[%c0_47, %c0_48, %c0_49, %c0_50], %78 {strides = array<i32>} : memref<1x1x1x1xf32, #tpu.memory_space<vmem>>, vector<1x1x1x1xf32>,
    } else {
    }
    return
  }
  func.func @transform_0(%arg0: i32, %arg1: i32, %arg2: i32) -> (i32, i32, i32, i32) {
    %c1_i32 = arith.constant 1 : i32
    %0 = arith.muli %arg1, %c1_i32 : i32
    %1 = arith.addi %0, %arg2 : i32
    %c0_i32 = arith.constant 0 : i32
    %c0_i32_0 = arith.constant 0 : i32
    %c0_i32_1 = arith.constant 0 : i32
    return %arg0, %c0_i32, %1, %c0_i32_0 : i32, i32, i32, i32
  }
  func.func @transform_1(%arg0: i32, %arg1: i32, %arg2: i32) -> (i32, i32, i32) {
    %c1_i32 = arith.constant 1 : i32
    %0 = arith.muli %arg1, %c1_i32 : i32
    %1 = arith.addi %0, %arg2 : i32
    %c0_i32 = arith.constant 0 : i32
    %c0_i32_0 = arith.constant 0 : i32
    return %arg0, %1, %c0_i32 : i32, i32, i32
  }
  func.func @transform_2(%arg0: i32, %arg1: i32, %arg2: i32) -> (i32, i32, i32, i32) {
    %c0_i32 = arith.constant 0 : i32
    %c0_i32_0 = arith.constant 0 : i32
    %c0_i32_1 = arith.constant 0 : i32
    return %arg0, %arg1, %c0_i32, %c0_i32_0 : i32, i32, i32, i32
  }
}

</mosaic_0001>

<bundles_post_ra>
// kernel: tpu_custom_call.1
= control target key start
LH: loop header
LB: loop body
LE: loop exit
PB: predicated region body
PF: predicated region fallthrough
CT: control target
= control target key end

     0   :  { %7 = vsyncpa [#allocation4], 0  ;;  %s773_s0 = inlined_call_operand.hbm [shape: f32[2,4,2,128], index: 0, kind: input, shape index: {}]   ;;  %s774_s1 = inlined_call_operand.hbm [shape: s32[2,2,128], index: 1, kind: input, shape index: {}]   ;;  %s775_s2 = inlined_call_operand.vmem [shape: f32[2,1,1,1], index: 2, kind: output, shape index: {}]  }
   0x1   :  { %9 = vsyncpa [#allocation4 + $0x1], 0 }
   0x2   :  { %10 = vsyncpa [#allocation6], 0 }
   0x3   :  { %12 = vsyncpa [#allocation6 + $0x1], 0  ;;  %s649_s9 = smov 0   ;;  %s651_s10 = smov 0  }
   0x4   :  { %s653_s11 = smov 0   ;;  %s655_s12 = smov 0  }
   0x5   :  { %s657_s13 = smov 0   ;;  %s659_s14 = smov 0  }
   0x6 LB: > { %s422_s15 = sadd.s32 4294967295, %s627_s14   ;;  %s37_s16 = sadd.s32 1, %s623_s13  ;;  %s627_s14 = sphi %s659_s14, %s18_s14   ;;  %s623_s13 = sphi %s657_s13, %s784_s13   ;;  %s619_s12 = sphi %s655_s12, %s783_s12   ;;  %s615_s11 = sphi %s653_s11, %s782_s11   ;;  %s611_s10 = sphi %s651_s10, %s781_s10   ;;  %s607_s9 = sphi %s649_s9, %s780_s9  }
   0x7   : > { %p39_p0 = scmp.ge.s32.totalorder %s37_s16, 2  ;;  %s48_s17 = sadd.s32 1, %s615_s11 }
   0x8   : > { %p55_p1 = scmp.ne.s32.totalorder %s615_s11, %s611_s10  ;;  %p56_p2 = scmp.eq.s32.totalorder %s627_s14, 0 }
   0x9   : > { %s786_s16 = smov (%p39_p0, %s37_s16), 0  ;;  %p61_p4 = scmp.ne.s32.totalorder %s611_s10, %s607_s9 }
   0xa   : > { %p685_p3 = por %p56_p2, %p55_p1  ;;  %s43_s19 = ssub.s32 %s623_s13, %s786_s16 }
   0xb   : > { %p62_p5 = scmp.eq.s32.totalorder %s422_s15, 0  ;;  %p46_p6 = scmp.eq.s32.totalorder %s43_s19, 0 }
   0xc   : > { %p453_p8 = scmp.lt.s32.totalorder %s627_s14, 2  ;;  %s701_s22 = sand.u32 1, %s615_s11  }
   0xd   : > { %p692_p7 = por %p62_p5, %p61_p4  ;;  %s439_s23 = sshll.u32 %s623_s13, 7 }
   0xe   : > { %s698_s21 = scalar_select %p46_p6, %s615_s11, %s48_s17  }
   0xf   : > { %s426_s24 = sshll.u32 %s701_s22, 3  ;;  %s155_s27 = scalar_lea.hbm %s773_s0, %s439_s23 }
  0x10   : > { %s147_s28 = scalar_lea.vmem [#allocation3], %s426_s24  ;;  %p710_p9 = pnand %p453_p8, %p685_p3 }
  0x11   : > { %s156_s29 = sshll.u32 %s147_s28, 4  ;;  %s144_s3 = scalar_lea.sflag [#allocation4], %s701_s22  ;;  %s157_s29 = int_to_ptr.vmem [resolvable:$true] %s156_s29 }
  0x12   : > { %p519_p10 = pneg %p710_p9  ;;  %s530_s4 = scalar_lea.vmem %s157_s29, 128 }
  0x13   : > { %p531_p11 = scmp.ne.s32.totalorder %s157_s29, %s530_s4  ;;  %s629_s5 = smov [#allocation3]  }
  0x14   : > { %s535_s6 = sshll.u32 %s629_s5, 4  ;;  %s536_s6 = int_to_ptr.vmem [resolvable:$false] %s535_s6 }
  0x15   : > { %p533_p12 = pnand %p531_p11, %p519_p10  ;;  %s537_s7 = scalar_lea.vmem %s536_s6, 256 }
  0x16   : > { %p538_p0 = scmp.lt.s32.totalorder %s157_s29, %s536_s6  ;;  %p539_p1 = scmp.lt.s32.totalorder %s537_s7, %s530_s4 }
  0x17   : > { %p534_p13 = pneg %p533_p12 }
  0x18   : > { %p540_p2 = por %p539_p1, %p538_p0 }
  0x1a   : > { %p541_p3 = pnand %p540_p2, %p534_p13 }
  0x1c   : > { %544 = shalt.err (!%p541_p3)
}
  0x1d   : > { %s630_s8 = smov 32   ;;  %s631_s9 = smov 2  }
  0x1e   : > { %449 = dma.hbm_to_vmem [thread:$0]  (!%p710_p9), %s155_s27, 128, %s157_s29, %s144_s3, %s630_s8, %s630_s8, %s631_s9  }
  0x1f   : > { %p431_p4 = scmp.ge.s32.totalorder %s627_s14, 1  ;;  %p184_p5 = scmp.lt.s32.totalorder %s627_s14, 3 }
  0x20   : > { %s429_s15 = sshll.u32 %s701_s22, 1  ;;  %s430_s18 = sshll.u32 %s623_s13, 5 }
  0x21   : > { %p725_p6 = pnand %p431_p4, %p184_p5  ;;  %s170_s19 = scalar_lea.vmem [#allocation5], %s429_s15 }
  0x22   : > { %s179_s23 = sshll.u32 %s170_s19, 4  ;;  %s177_s26 = scalar_lea.hbm %s774_s1, %s430_s18  ;;  %s180_s23 = int_to_ptr.vmem [resolvable:$true] %s179_s23 }
  0x23   : > { %s167_s28 = scalar_lea.sflag [#allocation6], %s701_s22  ;;  %s558_s4 = scalar_lea.vmem %s180_s23, 32 }
  0x24   : > { %p559_p8 = scmp.ne.s32.totalorder %s180_s23, %s558_s4  ;;  %s632_s27 = smov [#allocation5]  }
  0x25   : > { %s563_s29 = sshll.u32 %s632_s27, 4  ;;  %s564_s29 = int_to_ptr.vmem [resolvable:$false] %s563_s29 }
  0x26   : > { %p561_p11 = pnand %p559_p8, %p519_p10  ;;  %s565_s3 = scalar_lea.vmem %s564_s29, 64 }
  0x27   : > { %p566_p13 = scmp.lt.s32.totalorder %s180_s23, %s564_s29  ;;  %p567_p0 = scmp.lt.s32.totalorder %s565_s3, %s558_s4 }
  0x28   : > { %p562_p12 = pneg %p561_p11 }
  0x29   : > { %p568_p1 = por %p567_p0, %p566_p13 }
  0x2b   : > { %p569_p2 = pnand %p568_p1, %p562_p12 }
  0x2d   : > { %572 = shalt.err (!%p569_p2)
}
  0x2e   : > { %452 = dma.hbm_to_vmem [thread:$0]  (!%p710_p9), %s177_s26, 32, %s180_s23, %s167_s28  }
  0x2f   : > { %188 = sbr.rel (%p725_p6) target bundleno = 327 (0x147), region = 28  ;;  %s190_s22 = sand.u32 (!%p725_p6), 1, %s611_s10  }
  0x30   : > { %s432_s5 = sshll.u32 (!%p725_p6), %s190_s22, 3  ;;  %s191_s6 = scalar_lea.sflag (!%p725_p6), [#allocation4], %s190_s22 }
  0x31   : > { %s194_s7 = scalar_lea.vmem (!%p725_p6), [#allocation3], %s432_s5 }
  0x34   : > { %598 = dma.done.wait (%p692_p7), %s191_s6, 128  }
  0x35   : > { %600 = vsyncadd (%p692_p7), %s191_s6, 4294967168  ;;  %s433_s8 = sshll.u32 %s190_s22, 1  ;;  %s200_s9 = scalar_lea.sflag [#allocation6], %s190_s22 }
  0x36   : > { %s203_s15 = scalar_lea.vmem [#allocation5], %s433_s8 }
  0x37   : > { %602 = dma.done.wait (%p692_p7), %s200_s9, 32  }
  0x38   : > { %604 = vsyncadd (%p692_p7), %s200_s9, 4294967264  ;;  %v633_v0 = vmov 0.0   ;;  %v244_v1 = vld [vmem:[%s194_s7] sm:$0x3]  ;;  %v434_v2 = vld [vmem:[%s194_s7 + $0x2] sm:$0x3] }
  0x39   : > { %242 = vst [vmem:[#allocation2] sm:$0x3] %v633_v0  ;;  %v247_v3 = vmax.f32 %v244_v1, %v434_v2  ;;  %v435_v4 = vld [vmem:[%s194_s7 + $0x4] sm:$0x3]  ;;  %v436_v5 = vld [vmem:[%s194_s7 + $0x6] sm:$0x3] }
  0x3a   : > { %v243_v22 = vld [vmem:[%s203_s15] sm:$0x3]  ;;  %vm300_vm4 = vcmask 1041408   ;;  %p232_p7 = scmp.lt.s32.totalorder %s619_s12, 1  ;;  %vm312_vm5 = vcmask 0  }
  0x3b   : > { %v250_v6 = vmax.f32 %v247_v3, %v435_v4  ;;  %vm258_vm0 = vcmp.eq.s32.totalorder %v243_v22, 0  ;;  %vm265_vm1 = vcmp.eq.s32.totalorder %v243_v22, 1  ;;  %vm272_vm2 = vcmp.eq.s32.totalorder %v243_v22, 2 }
  0x3c   : > { %v259_v25 = vsel %vm258_vm0, %v244_v1, 0.0  ;;  %vm279_vm3 = vcmp.eq.s32.totalorder %v243_v22, 3  ;;  %s788_s12 = smov (!%p232_p7, %s619_s12), 1 }
  0x3d   : > { %v253_v7 = vmax.f32 %v250_v6, %v436_v5  ;;  %v266_v27 = vsel %vm265_vm1, %v434_v2, %v259_v25  ;;  %s237_s17 = scalar_lea.vmem %s775_s2, %s788_s12 }
  0x3e   : > { %v273_v29 = vsel %vm272_vm2, %v435_v4, %v266_v27 }
  0x3f   : > { %v254_v8 = vsub.f32 %v244_v1, %v253_v7  ;;  %v261_v9 = vsub.f32 %v434_v2, %v253_v7  ;;  %v268_v10 = vsub.f32 %v435_v4, %v253_v7  ;;  %v275_v11 = vsub.f32 %v436_v5, %v253_v7 }
  0x40   : > { %v280_v34 = vsel %vm279_vm3, %v436_v5, %v273_v29  ;;  %v293_v42 = vld [vmem:[#allocation2] sm:$0x3] }
  0x41   : > { %v255_v12 = vmul.f32 1.442695, %v254_v8  ;;  %v262_v13 = vmul.f32 1.442695, %v261_v9  ;;  %v269_v14 = vmul.f32 1.442695, %v268_v10 }
  0x42   : > { %v276_v15 = vmul.f32 1.442695, %v275_v11 }
  0x43   : > { %505 = vpow2.f32 %v255_v12 }
  0x44   : > { %507 = vpow2.f32 %v262_v13 }
  0x45   : > { %509 = vpow2.f32 %v269_v14 }
  0x46   : > { %511 = vpow2.f32 %v276_v15 }
  0x50   : > { %v506_v16 = vpop.eup %505 }
  0x51   : > { %v508_v17 = vpop.eup %507  ;;  %v260_v24 = vsel %vm258_vm0, %v506_v16, 0.0 }
  0x52   : > { %v510_v18 = vpop.eup %509  ;;  %v264_v19 = vadd.f32 %v508_v17, %v506_v16  ;;  %v267_v26 = vsel %vm265_vm1, %v508_v17, %v260_v24 }
  0x53   : > { %v512_v20 = vpop.eup %511  ;;  %v274_v28 = vsel %vm272_vm2, %v510_v18, %v267_v26 }
  0x54   : > { %v271_v21 = vadd.f32 %v510_v18, %v264_v19  ;;  %v281_v30 = vsel %vm279_vm3, %v512_v20, %v274_v28 }
  0x56   : > { %v278_v23 = vadd.f32 %v512_v20, %v271_v21 }
  0x58   : > { %513 = vlog2.f32 %v278_v23 }
  0x59   : > { %515 = vrcp.f32 %v278_v23 }
  0x65   : > { %v514_v31 = vpop.eup %513 }
  0x66   : > { %v516_v32 = vpop.eup %515  ;;  %v283_v33 = vmul.f32 0.6931472, %v514_v31 }
  0x67   : > { %v288_v35 = vmul.f32 %v516_v32, %v281_v30 }
  0x68   : > { %v284_v36 = vadd.f32 %v283_v33, %v253_v7 }
  0x69   : > { %v289_v37 = vsub.f32 1.0, %v288_v35 }
  0x6a   : > { %v285_v38 = vsub.f32 %v284_v36, %v280_v34 }
  0x6b   : > { %v290_v39 = vmul.f32 %v289_v37, %v289_v37 }
  0x6c   : > { %v286_v40 = vmax.f32 %v285_v38, 0.0 }
  0x6e   : > { %v291_v41 = vmul.f32 %v290_v39, %v286_v40 }
  0x70   : > { %v292_v43 = vmul.f32 0.25, %v291_v41 }
  0x72   : > { %v294_v44 = vadd.f32 %v293_v42, %v292_v43 }
  0x74   : > { %295 = vst [vmem:[#allocation2] sm:$0x3] %v294_v44 }
  0x7b   : > { %v299_v45 = vld [vmem:[#allocation2] sm:$0x3] }
  0x7c   : > { %v301_v46 = vsel %vm300_vm4, %v299_v45, 0.0 }
  0x7d   : > { %302 = vadd.xlane.f32.xlu0 %v301_v46 }
 0x106   : > { %v303_v47 = vpop.xlane.xlu0 %302 }
 0x107   : > { %v304_v48 = vrot.slane %v303_v47, 4 }
 0x109   : > { %v305_v49 = vadd.f32 %v304_v48, %v303_v47 }
 0x10b   : > { %v306_v50 = vrot.slane %v305_v49, 2 }
 0x10d   : > { %v307_v51 = vadd.f32 %v306_v50, %v305_v49 }
 0x10f   : > { %v308_v52 = vrot.slane %v307_v51, 1 }
 0x111   : > { %v309_v53 = vadd.f32 %v308_v52, %v307_v51 }
 0x113   : > { %440 = vpush %v309_v53 }
 0x144   : > { %s441_s18 = spop %440 }
 0x145   : > { %v311_v54 = vstv %s441_s18 }
 0x146   : > { %313 = vst.msk [vmem:[%s237_s17] sm:$0x1] %vm312_vm5, %v311_v54 }
 0x147 PF: > { %s18_s14 = sadd.s32 1, %s627_s14   ;;  %s780_s9 = smov %s611_s10 }
 0x148   : > { %p15_p9 = scmp.ge.s32.totalorder %s18_s14, 4   ;;  %s781_s10 = smov %s615_s11 }
 0x149   : > { %s782_s11 = smov %s698_s21  ;;  %s783_s12 = smov %s623_s13 }
 0x14a   : > { %s784_s13 = smov %s786_s16  ;;  %17 = sbr.rel (!%p15_p9) target bundleno = 6 (0x6), region = 92 }
 0x14f   :  { %337 = vsyncpa [#allocation4], 1 }
 0x150   :  { %339 = vsyncpa [#allocation4 + $0x1], 1 }
 0x151   :  { %340 = vsyncpa [#allocation6], 1 }
 0x152   :  { %342 = vsyncpa [#allocation6 + $0x1], 1 }

</bundles_post_ra>
